<compile_context>
chip_gen: v7x
topology: tpu7x:2x2x1
jax: 0.10.0
libtpu: 0.0.40
codegen_flags: <defaults>
</compile_context>

<pallas_src>
import functools

import jax
import jax.numpy as jnp
from jax import lax
from jax.experimental import pallas as pl
from jax.experimental.pallas import tpu as pltpu

D_IN, H1, H2, D_OUT = 2, 8, 4, 1

LANES = 128                     # vreg lane width
SUBLANES = 8                    # vreg sublane depth
MIN_ROWS = SUBLANES * LANES     # 1024: smallest lane/sublane-aligned batch tile
CHUNK_S = SUBLANES              # sublane rows per inner chunk (= 1024 batch rows)

# Offsets of each parameter inside the packed SMEM parameter vector.
W1_OFF = 0
B1_OFF = W1_OFF + D_IN * H1      # 16
W2_OFF = B1_OFF + H1             # 24
B2_OFF = W2_OFF + H1 * H2        # 56
W3_OFF = B2_OFF + H2             # 60
B3_OFF = W3_OFF + H2 * D_OUT     # 64
N_PARAMS = B3_OFF + D_OUT        # 65


def _round_up(n, m):
    return ((n + m - 1) // m) * m


def _cdiv(a, b):
    return (a + b - 1) // b


def actor_mlp_kernel(p_ref, x_ref, o_ref, *, compute_dtype):
    """Fused 3-layer MLP on the VPU.

    p_ref : (N_PARAMS,) f32 in SMEM  -- packed weights/biases (scalar reads).
    x_ref : (D_IN, tile_s, 128) f32 in VMEM -- batch rows on (sublane, lane).
    o_ref : (D_OUT, tile_s, 128) f32 in VMEM.
    """
    cdt = compute_dtype

    # Hoist all 65 parameter scalars out of the batch-chunk loop.
    def getp(off):
        return p_ref[off].astype(cdt)

    W1 = [[getp(W1_OFF + k * H1 + j) for j in range(H1)] for k in range(D_IN)]
    B1 = [getp(B1_OFF + j) for j in range(H1)]
    W2 = [[getp(W2_OFF + k * H2 + j) for j in range(H2)] for k in range(H1)]
    B2 = [getp(B2_OFF + j) for j in range(H2)]
    W3 = [getp(W3_OFF + k) for k in range(H2)]
    B3 = getp(B3_OFF)

    tile_s = x_ref.shape[1]
    n_chunks = tile_s // CHUNK_S

    def chunk(c, carry):
        r0 = pl.multiple_of(c * CHUNK_S, CHUNK_S)

        # Two (8, 128) vregs: feature 0 and feature 1 for 1024 batch rows.
        rows = [x_ref[k, pl.ds(r0, CHUNK_S), :].astype(cdt) for k in range(D_IN)]

        # Layer 1: 2 -> 8, bias folded into the first FMA term, then ReLU.
        h1 = []
        for j in range(H1):
            acc = rows[0] * W1[0][j] + B1[j]
            acc = acc + rows[1] * W1[1][j]
            h1.append(jnp.maximum(acc, 0))

        # Layer 2: 8 -> 4, pairwise-tree accumulation (short critical chain), ReLU.
        h2 = []
        for j in range(H2):
            t = [h1[k] * W2[k][j] for k in range(H1)]
            s = ((t[0] + t[1]) + (t[2] + t[3])) + \
                ((t[4] + t[5]) + ((t[6] + t[7]) + B2[j]))
            h2.append(jnp.maximum(s, 0))

        # Layer 3: 4 -> 1, then Tanh (EUP slot).
        p0 = h2[0] * W3[0] + B3
        p1 = h2[1] * W3[1]
        p2 = h2[2] * W3[2]
        p3 = h2[3] * W3[3]
        out = jnp.tanh((p0 + p1) + (p2 + p3))

        o_ref[0, pl.ds(r0, CHUNK_S), :] = out.astype(o_ref.dtype)
        return carry

    # Fully unrolled 1024-row chunks: bounds vreg live ranges (~15 regs/chunk)
    # so VALU stays the only binding slot even at tile_s = 512.
    lax.fori_loop(0, n_chunks, chunk, None, unroll=True)


def _pack_params(params):
    w1, b1, w2, b2, w3, b3 = params
    return jnp.concatenate(
        [w1.reshape(-1), b1.reshape(-1),
         w2.reshape(-1), b2.reshape(-1),
         w3.reshape(-1), b3.reshape(-1)]
    ).astype(jnp.float32)


def actor_net_forward(x, params, *, tile_rows=65536, min_parallel_steps=2,
                      compute_dtype=jnp.float32, feature_major=False):
    """Runs the fused MLP kernel with a lane-dense (features, batch) layout.

    x: (B, D_IN); or (D_IN, B) with feature_major=True (skips the wrapper
       transpose HBM pass entirely).
    compute_dtype: jnp.float32 (exact) or jnp.bfloat16 (faster on v6e/v7x).
    """
    x = x.astype(jnp.float32)                    # mirrors x.to(torch.float32)
    if feature_major:
        assert x.shape[0] == D_IN
        x_t = x
    else:
        assert x.shape[1] == D_IN
        x_t = x.T                                # only remaining extra HBM pass
    B = x_t.shape[1]
    if B == 0:                                   # degenerate-batch guard
        return jnp.zeros((0, D_OUT), jnp.float32)

    # ---- batch tiling ------------------------------------------------------
    # Pad only to the 1024-row granule (<= 1023 dead rows), then pick the grid
    # step count so tiles stay <= tile_rows and, when there is enough work,
    # there are >= min_parallel_steps steps for v7x's two TensorCores.
    B_aligned = _round_up(B, MIN_ROWS)
    steps = _cdiv(B_aligned, tile_rows)
    if B_aligned >= min_parallel_steps * MIN_ROWS:
        steps = max(steps, min_parallel_steps)
    rows_per_tile = _round_up(_cdiv(B_aligned, steps), MIN_ROWS)
    B_pad = rows_per_tile * steps
    S = B_pad // LANES
    tile_s = rows_per_tile // LANES              # multiple of 8 by construction

    x_t = jnp.pad(x_t, ((0, 0), (0, B_pad - B)))
    x_r = x_t.reshape(D_IN, S, LANES)            # batch on lanes (free reshape)

    packed = _pack_params(params)
    kernel = functools.partial(actor_mlp_kernel, compute_dtype=compute_dtype)

    out = pl.pallas_call(
        kernel,
        out_shape=jax.ShapeDtypeStruct((D_OUT, S, LANES), jnp.float32),
        grid_spec=pltpu.PrefetchScalarGridSpec(
            num_scalar_prefetch=0,
            grid=(steps,),
            in_specs=[
                # All weights/biases: one tiny packed array resident in SMEM.
                pl.BlockSpec(memory_space=pltpu.MemorySpace.SMEM),
                # Batch tile: full feature dim, tile_s*128 batch rows per step.
                pl.BlockSpec((D_IN, tile_s, LANES), lambda i: (0, i, 0)),
            ],
            out_specs=pl.BlockSpec((D_OUT, tile_s, LANES), lambda i: (0, i, 0)),
        ),
        compiler_params=pltpu.CompilerParams(
            dimension_semantics=("parallel",),   # batch axis shards across TCs (v7x)
        ),
    )(packed, x_r)

    # (D_OUT, S, 128) -> (D_OUT, B_pad) -> (B, D_OUT), dropping the pad rows.
    return out.reshape(D_OUT, B_pad).T[:B]


def init_params(key):
    """Deterministic init mimicking torch.nn.Linear (uniform +/- 1/sqrt(fan_in))."""
    def linear(key, fan_in, fan_out):
        kw, kb = jax.random.split(key)
        bound = 1.0 / jnp.sqrt(fan_in)
        w = jax.random.uniform(kw, (fan_in, fan_out), jnp.float32, -bound, bound)
        b = jax.random.uniform(kb, (fan_out,), jnp.float32, -bound, bound)
        return w, b

    k1, k2, k3 = jax.random.split(key, 3)
    w1, b1 = linear(k1, D_IN, H1)
    w2, b2 = linear(k2, H1, H2)
    w3, b3 = linear(k3, H2, D_OUT)
    return w1, b1, w2, b2, w3, b3


def reference_forward(x, params):
    """Pure-JAX reference of the PyTorch forward for correctness checking."""
    w1, b1, w2, b2, w3, b3 = params
    x = x.astype(jnp.float32)
    h = jnp.maximum(x @ w1 + b1, 0.0)
    h = jnp.maximum(h @ w2 + b2, 0.0)
    return jnp.tanh(h @ w3 + b3)


if __name__ == "__main__":
    key = jax.random.PRNGKey(0)
    k_params, k_x1, k_x2 = jax.random.split(key, 3)

    params = init_params(k_params)

    # Small batch (not a multiple of 128): single grid step + padding path.
    x_small = jax.random.normal(k_x1, (100, D_IN), dtype=jnp.float32)
    out_small = jax.block_until_ready(actor_net_forward(x_small, params))
    ref_small = reference_forward(x_small, params)
    assert out_small.shape == (100, D_OUT)
    assert jnp.allclose(out_small, ref_small, atol=1e-5, rtol=1e-5)

    # Larger batch: exercises the >=2 grid steps (v7x megacore) and the
    # multi-chunk inner loop, with minimal padding waste.
    x_big = jax.random.normal(k_x2, (5000, D_IN), dtype=jnp.float32)
    out_big = jax.block_until_ready(actor_net_forward(x_big, params))
    ref_big = reference_forward(x_big, params)
    assert out_big.shape == (5000, D_OUT)
    assert jnp.allclose(out_big, ref_big, atol=1e-5, rtol=1e-5)

    # Optional bf16 VALU path (v6e/v7x win, functionally fine everywhere);
    # tolerance loosened accordingly.
    out_bf16 = jax.block_until_ready(
        actor_net_forward(x_small, params, compute_dtype=jnp.bfloat16))
    assert jnp.allclose(out_bf16, ref_small, atol=1e-1, rtol=1e-1)

    print("KERNEL_OK")
</pallas_src>

<mosaic_0001>
module attributes {stable_mosaic.version = 11 : i64} {
  func.func @actor_mlp_kernel(%arg0: i32, %arg1: memref<65xf32, #tpu.memory_space<smem>>, %arg2: memref<2x8x128xf32, #tpu.memory_space<vmem>>, %arg3: memref<1x8x128xf32, #tpu.memory_space<vmem>>) attributes {dimension_semantics = [#tpu.dimension_semantics<parallel>], iteration_bounds = array<i64: 1>, scalar_prefetch = 0 : i64, scratch_operands = 0 : i64, tpu.core_type = #tpu.core_type<tc>, window_params = [{transform_indices = @transform_0, window_bounds = array<i64: 65>}, {transform_indices = @transform_1, window_bounds = array<i64: 2, 8, 128>}, {transform_indices = @transform_2, window_bounds = array<i64: 1, 8, 128>}]} {
    %c0 = arith.constant 0 : index
    %0 = memref.load %arg1[%c0] : memref<65xf32, #tpu.memory_space<smem>>
    %c1 = arith.constant 1 : index
    %1 = memref.load %arg1[%c1] : memref<65xf32, #tpu.memory_space<smem>>
    %c2 = arith.constant 2 : index
    %2 = memref.load %arg1[%c2] : memref<65xf32, #tpu.memory_space<smem>>
    %c3 = arith.constant 3 : index
    %3 = memref.load %arg1[%c3] : memref<65xf32, #tpu.memory_space<smem>>
    %c4 = arith.constant 4 : index
    %4 = memref.load %arg1[%c4] : memref<65xf32, #tpu.memory_space<smem>>
    %c5 = arith.constant 5 : index
    %5 = memref.load %arg1[%c5] : memref<65xf32, #tpu.memory_space<smem>>
    %c6 = arith.constant 6 : index
    %6 = memref.load %arg1[%c6] : memref<65xf32, #tpu.memory_space<smem>>
    %c7 = arith.constant 7 : index
    %7 = memref.load %arg1[%c7] : memref<65xf32, #tpu.memory_space<smem>>
    %c8 = arith.constant 8 : index
    %8 = memref.load %arg1[%c8] : memref<65xf32, #tpu.memory_space<smem>>
    %c9 = arith.constant 9 : index
    %9 = memref.load %arg1[%c9] : memref<65xf32, #tpu.memory_space<smem>>
    %c10 = arith.constant 10 : index
    %10 = memref.load %arg1[%c10] : memref<65xf32, #tpu.memory_space<smem>>
    %c11 = arith.constant 11 : index
    %11 = memref.load %arg1[%c11] : memref<65xf32, #tpu.memory_space<smem>>
    %c12 = arith.constant 12 : index
    %12 = memref.load %arg1[%c12] : memref<65xf32, #tpu.memory_space<smem>>
    %c13 = arith.constant 13 : index
    %13 = memref.load %arg1[%c13] : memref<65xf32, #tpu.memory_space<smem>>
    %c14 = arith.constant 14 : index
    %14 = memref.load %arg1[%c14] : memref<65xf32, #tpu.memory_space<smem>>
    %c15 = arith.constant 15 : index
    %15 = memref.load %arg1[%c15] : memref<65xf32, #tpu.memory_space<smem>>
    %c16 = arith.constant 16 : index
    %16 = memref.load %arg1[%c16] : memref<65xf32, #tpu.memory_space<smem>>
    %c17 = arith.constant 17 : index
    %17 = memref.load %arg1[%c17] : memref<65xf32, #tpu.memory_space<smem>>
    %c18 = arith.constant 18 : index
    %18 = memref.load %arg1[%c18] : memref<65xf32, #tpu.memory_space<smem>>
    %c19 = arith.constant 19 : index
    %19 = memref.load %arg1[%c19] : memref<65xf32, #tpu.memory_space<smem>>
    %c20 = arith.constant 20 : index
    %20 = memref.load %arg1[%c20] : memref<65xf32, #tpu.memory_space<smem>>
    %c21 = arith.constant 21 : index
    %21 = memref.load %arg1[%c21] : memref<65xf32, #tpu.memory_space<smem>>
    %c22 = arith.constant 22 : index
    %22 = memref.load %arg1[%c22] : memref<65xf32, #tpu.memory_space<smem>>
    %c23 = arith.constant 23 : index
    %23 = memref.load %arg1[%c23] : memref<65xf32, #tpu.memory_space<smem>>
    %c24 = arith.constant 24 : index
    %24 = memref.load %arg1[%c24] : memref<65xf32, #tpu.memory_space<smem>>
    %c25 = arith.constant 25 : index
    %25 = memref.load %arg1[%c25] : memref<65xf32, #tpu.memory_space<smem>>
    %c26 = arith.constant 26 : index
    %26 = memref.load %arg1[%c26] : memref<65xf32, #tpu.memory_space<smem>>
    %c27 = arith.constant 27 : index
    %27 = memref.load %arg1[%c27] : memref<65xf32, #tpu.memory_space<smem>>
    %c28 = arith.constant 28 : index
    %28 = memref.load %arg1[%c28] : memref<65xf32, #tpu.memory_space<smem>>
    %c29 = arith.constant 29 : index
    %29 = memref.load %arg1[%c29] : memref<65xf32, #tpu.memory_space<smem>>
    %c30 = arith.constant 30 : index
    %30 = memref.load %arg1[%c30] : memref<65xf32, #tpu.memory_space<smem>>
    %c31 = arith.constant 31 : index
    %31 = memref.load %arg1[%c31] : memref<65xf32, #tpu.memory_space<smem>>
    %c32 = arith.constant 32 : index
    %32 = memref.load %arg1[%c32] : memref<65xf32, #tpu.memory_space<smem>>
    %c33 = arith.constant 33 : index
    %33 = memref.load %arg1[%c33] : memref<65xf32, #tpu.memory_space<smem>>
    %c34 = arith.constant 34 : index
    %34 = memref.load %arg1[%c34] : memref<65xf32, #tpu.memory_space<smem>>
    %c35 = arith.constant 35 : index
    %35 = memref.load %arg1[%c35] : memref<65xf32, #tpu.memory_space<smem>>
    %c36 = arith.constant 36 : index
    %36 = memref.load %arg1[%c36] : memref<65xf32, #tpu.memory_space<smem>>
    %c37 = arith.constant 37 : index
    %37 = memref.load %arg1[%c37] : memref<65xf32, #tpu.memory_space<smem>>
    %c38 = arith.constant 38 : index
    %38 = memref.load %arg1[%c38] : memref<65xf32, #tpu.memory_space<smem>>
    %c39 = arith.constant 39 : index
    %39 = memref.load %arg1[%c39] : memref<65xf32, #tpu.memory_space<smem>>
    %c40 = arith.constant 40 : index
    %40 = memref.load %arg1[%c40] : memref<65xf32, #tpu.memory_space<smem>>
    %c41 = arith.constant 41 : index
    %41 = memref.load %arg1[%c41] : memref<65xf32, #tpu.memory_space<smem>>
    %c42 = arith.constant 42 : index
    %42 = memref.load %arg1[%c42] : memref<65xf32, #tpu.memory_space<smem>>
    %c43 = arith.constant 43 : index
    %43 = memref.load %arg1[%c43] : memref<65xf32, #tpu.memory_space<smem>>
    %c44 = arith.constant 44 : index
    %44 = memref.load %arg1[%c44] : memref<65xf32, #tpu.memory_space<smem>>
    %c45 = arith.constant 45 : index
    %45 = memref.load %arg1[%c45] : memref<65xf32, #tpu.memory_space<smem>>
    %c46 = arith.constant 46 : index
    %46 = memref.load %arg1[%c46] : memref<65xf32, #tpu.memory_space<smem>>
    %c47 = arith.constant 47 : index
    %47 = memref.load %arg1[%c47] : memref<65xf32, #tpu.memory_space<smem>>
    %c48 = arith.constant 48 : index
    %48 = memref.load %arg1[%c48] : memref<65xf32, #tpu.memory_space<smem>>
    %c49 = arith.constant 49 : index
    %49 = memref.load %arg1[%c49] : memref<65xf32, #tpu.memory_space<smem>>
    %c50 = arith.constant 50 : index
    %50 = memref.load %arg1[%c50] : memref<65xf32, #tpu.memory_space<smem>>
    %c51 = arith.constant 51 : index
    %51 = memref.load %arg1[%c51] : memref<65xf32, #tpu.memory_space<smem>>
    %c52 = arith.constant 52 : index
    %52 = memref.load %arg1[%c52] : memref<65xf32, #tpu.memory_space<smem>>
    %c53 = arith.constant 53 : index
    %53 = memref.load %arg1[%c53] : memref<65xf32, #tpu.memory_space<smem>>
    %c54 = arith.constant 54 : index
    %54 = memref.load %arg1[%c54] : memref<65xf32, #tpu.memory_space<smem>>
    %c55 = arith.constant 55 : index
    %55 = memref.load %arg1[%c55] : memref<65xf32, #tpu.memory_space<smem>>
    %c56 = arith.constant 56 : index
    %56 = memref.load %arg1[%c56] : memref<65xf32, #tpu.memory_space<smem>>
    %c57 = arith.constant 57 : index
    %57 = memref.load %arg1[%c57] : memref<65xf32, #tpu.memory_space<smem>>
    %c58 = arith.constant 58 : index
    %58 = memref.load %arg1[%c58] : memref<65xf32, #tpu.memory_space<smem>>
    %c59 = arith.constant 59 : index
    %59 = memref.load %arg1[%c59] : memref<65xf32, #tpu.memory_space<smem>>
    %c60 = arith.constant 60 : index
    %60 = memref.load %arg1[%c60] : memref<65xf32, #tpu.memory_space<smem>>
    %c61 = arith.constant 61 : index
    %61 = memref.load %arg1[%c61] : memref<65xf32, #tpu.memory_space<smem>>
    %c62 = arith.constant 62 : index
    %62 = memref.load %arg1[%c62] : memref<65xf32, #tpu.memory_space<smem>>
    %c63 = arith.constant 63 : index
    %63 = memref.load %arg1[%c63] : memref<65xf32, #tpu.memory_space<smem>>
    %c64 = arith.constant 64 : index
    %64 = memref.load %arg1[%c64] : memref<65xf32, #tpu.memory_space<smem>>
    %c0_i32 = arith.constant 0 : i32
    %c8_i32 = arith.constant 8 : i32
    %65 = arith.muli %c0_i32, %c8_i32 : i32
    %66 = tpu.assume_multiple %65, 8 : i32
    %c0_0 = arith.constant 0 : index
    %67 = arith.index_cast %66 : i32 to index
    %c0_1 = arith.constant 0 : index
    %68 = vector.load %arg2[%c0_0, %67, %c0_1] : memref<2x8x128xf32, #tpu.memory_space<vmem>>, vector<1x8x128xf32>
    %69 = vector.shape_cast %68 : vector<1x8x128xf32> to vector<8x128xf32>
    %c1_2 = arith.constant 1 : index
    %70 = arith.index_cast %66 : i32 to index
    %c0_3 = arith.constant 0 : index
    %71 = vector.load %arg2[%c1_2, %70, %c0_3] : memref<2x8x128xf32, #tpu.memory_space<vmem>>, vector<1x8x128xf32>
    %72 = vector.shape_cast %71 : vector<1x8x128xf32> to vector<8x128xf32>
    %73 = vector.broadcast %0 : f32 to vector<8x128xf32>
    %74 = arith.mulf %69, %73 : vector<8x128xf32>
    %75 = vector.broadcast %16 : f32 to vector<8x128xf32>
    %76 = arith.addf %74, %75 : vector<8x128xf32>
    %77 = vector.broadcast %8 : f32 to vector<8x128xf32>
    %78 = arith.mulf %72, %77 : vector<8x128xf32>
    %79 = arith.addf %76, %78 : vector<8x128xf32>
    %cst = arith.constant 0.000000e+00 : f32
    %80 = vector.broadcast %cst : f32 to vector<8x128xf32>
    %81 = arith.maximumf %79, %80 : vector<8x128xf32>
    %82 = vector.broadcast %1 : f32 to vector<8x128xf32>
    %83 = arith.mulf %69, %82 : vector<8x128xf32>
    %84 = vector.broadcast %17 : f32 to vector<8x128xf32>
    %85 = arith.addf %83, %84 : vector<8x128xf32>
    %86 = vector.broadcast %9 : f32 to vector<8x128xf32>
    %87 = arith.mulf %72, %86 : vector<8x128xf32>
    %88 = arith.addf %85, %87 : vector<8x128xf32>
    %cst_4 = arith.constant 0.000000e+00 : f32
    %89 = vector.broadcast %cst_4 : f32 to vector<8x128xf32>
    %90 = arith.maximumf %88, %89 : vector<8x128xf32>
    %91 = vector.broadcast %2 : f32 to vector<8x128xf32>
    %92 = arith.mulf %69, %91 : vector<8x128xf32>
    %93 = vector.broadcast %18 : f32 to vector<8x128xf32>
    %94 = arith.addf %92, %93 : vector<8x128xf32>
    %95 = vector.broadcast %10 : f32 to vector<8x128xf32>
    %96 = arith.mulf %72, %95 : vector<8x128xf32>
    %97 = arith.addf %94, %96 : vector<8x128xf32>
    %cst_5 = arith.constant 0.000000e+00 : f32
    %98 = vector.broadcast %cst_5 : f32 to vector<8x128xf32>
    %99 = arith.maximumf %97, %98 : vector<8x128xf32>
    %100 = vector.broadcast %3 : f32 to vector<8x128xf32>
    %101 = arith.mulf %69, %100 : vector<8x128xf32>
    %102 = vector.broadcast %19 : f32 to vector<8x128xf32>
    %103 = arith.addf %101, %102 : vector<8x128xf32>
    %104 = vector.broadcast %11 : f32 to vector<8x128xf32>
    %105 = arith.mulf %72, %104 : vector<8x128xf32>
    %106 = arith.addf %103, %105 : vector<8x128xf32>
    %cst_6 = arith.constant 0.000000e+00 : f32
    %107 = vector.broadcast %cst_6 : f32 to vector<8x128xf32>
    %108 = arith.maximumf %106, %107 : vector<8x128xf32>
    %109 = vector.broadcast %4 : f32 to vector<8x128xf32>
    %110 = arith.mulf %69, %109 : vector<8x128xf32>
    %111 = vector.broadcast %20 : f32 to vector<8x128xf32>
    %112 = arith.addf %110, %111 : vector<8x128xf32>
    %113 = vector.broadcast %12 : f32 to vector<8x128xf32>
    %114 = arith.mulf %72, %113 : vector<8x128xf32>
    %115 = arith.addf %112, %114 : vector<8x128xf32>
    %cst_7 = arith.constant 0.000000e+00 : f32
    %116 = vector.broadcast %cst_7 : f32 to vector<8x128xf32>
    %117 = arith.maximumf %115, %116 : vector<8x128xf32>
    %118 = vector.broadcast %5 : f32 to vector<8x128xf32>
    %119 = arith.mulf %69, %118 : vector<8x128xf32>
    %120 = vector.broadcast %21 : f32 to vector<8x128xf32>
    %121 = arith.addf %119, %120 : vector<8x128xf32>
    %122 = vector.broadcast %13 : f32 to vector<8x128xf32>
    %123 = arith.mulf %72, %122 : vector<8x128xf32>
    %124 = arith.addf %121, %123 : vector<8x128xf32>
    %cst_8 = arith.constant 0.000000e+00 : f32
    %125 = vector.broadcast %cst_8 : f32 to vector<8x128xf32>
    %126 = arith.maximumf %124, %125 : vector<8x128xf32>
    %127 = vector.broadcast %6 : f32 to vector<8x128xf32>
    %128 = arith.mulf %69, %127 : vector<8x128xf32>
    %129 = vector.broadcast %22 : f32 to vector<8x128xf32>
    %130 = arith.addf %128, %129 : vector<8x128xf32>
    %131 = vector.broadcast %14 : f32 to vector<8x128xf32>
    %132 = arith.mulf %72, %131 : vector<8x128xf32>
    %133 = arith.addf %130, %132 : vector<8x128xf32>
    %cst_9 = arith.constant 0.000000e+00 : f32
    %134 = vector.broadcast %cst_9 : f32 to vector<8x128xf32>
    %135 = arith.maximumf %133, %134 : vector<8x128xf32>
    %136 = vector.broadcast %7 : f32 to vector<8x128xf32>
    %137 = arith.mulf %69, %136 : vector<8x128xf32>
    %138 = vector.broadcast %23 : f32 to vector<8x128xf32>
    %139 = arith.addf %137, %138 : vector<8x128xf32>
    %140 = vector.broadcast %15 : f32 to vector<8x128xf32>
    %141 = arith.mulf %72, %140 : vector<8x128xf32>
    %142 = arith.addf %139, %141 : vector<8x128xf32>
    %cst_10 = arith.constant 0.000000e+00 : f32
    %143 = vector.broadcast %cst_10 : f32 to vector<8x128xf32>
    %144 = arith.maximumf %142, %143 : vector<8x128xf32>
    %145 = vector.broadcast %24 : f32 to vector<8x128xf32>
    %146 = arith.mulf %81, %145 : vector<8x128xf32>
    %147 = vector.broadcast %28 : f32 to vector<8x128xf32>
    %148 = arith.mulf %90, %147 : vector<8x128xf32>
    %149 = vector.broadcast %32 : f32 to vector<8x128xf32>
    %150 = arith.mulf %99, %149 : vector<8x128xf32>
    %151 = vector.broadcast %36 : f32 to vector<8x128xf32>
    %152 = arith.mulf %108, %151 : vector<8x128xf32>
    %153 = vector.broadcast %40 : f32 to vector<8x128xf32>
    %154 = arith.mulf %117, %153 : vector<8x128xf32>
    %155 = vector.broadcast %44 : f32 to vector<8x128xf32>
    %156 = arith.mulf %126, %155 : vector<8x128xf32>
    %157 = vector.broadcast %48 : f32 to vector<8x128xf32>
    %158 = arith.mulf %135, %157 : vector<8x128xf32>
    %159 = vector.broadcast %52 : f32 to vector<8x128xf32>
    %160 = arith.mulf %144, %159 : vector<8x128xf32>
    %161 = arith.addf %146, %148 : vector<8x128xf32>
    %162 = arith.addf %150, %152 : vector<8x128xf32>
    %163 = arith.addf %161, %162 : vector<8x128xf32>
    %164 = arith.addf %154, %156 : vector<8x128xf32>
    %165 = arith.addf %158, %160 : vector<8x128xf32>
    %166 = vector.broadcast %56 : f32 to vector<8x128xf32>
    %167 = arith.addf %165, %166 : vector<8x128xf32>
    %168 = arith.addf %164, %167 : vector<8x128xf32>
    %169 = arith.addf %163, %168 : vector<8x128xf32>
    %cst_11 = arith.constant 0.000000e+00 : f32
    %170 = vector.broadcast %cst_11 : f32 to vector<8x128xf32>
    %171 = arith.maximumf %169, %170 : vector<8x128xf32>
    %172 = vector.broadcast %25 : f32 to vector<8x128xf32>
    %173 = arith.mulf %81, %172 : vector<8x128xf32>
    %174 = vector.broadcast %29 : f32 to vector<8x128xf32>
    %175 = arith.mulf %90, %174 : vector<8x128xf32>
    %176 = vector.broadcast %33 : f32 to vector<8x128xf32>
    %177 = arith.mulf %99, %176 : vector<8x128xf32>
    %178 = vector.broadcast %37 : f32 to vector<8x128xf32>
    %179 = arith.mulf %108, %178 : vector<8x128xf32>
    %180 = vector.broadcast %41 : f32 to vector<8x128xf32>
    %181 = arith.mulf %117, %180 : vector<8x128xf32>
    %182 = vector.broadcast %45 : f32 to vector<8x128xf32>
    %183 = arith.mulf %126, %182 : vector<8x128xf32>
    %184 = vector.broadcast %49 : f32 to vector<8x128xf32>
    %185 = arith.mulf %135, %184 : vector<8x128xf32>
    %186 = vector.broadcast %53 : f32 to vector<8x128xf32>
    %187 = arith.mulf %144, %186 : vector<8x128xf32>
    %188 = arith.addf %173, %175 : vector<8x128xf32>
    %189 = arith.addf %177, %179 : vector<8x128xf32>
    %190 = arith.addf %188, %189 : vector<8x128xf32>
    %191 = arith.addf %181, %183 : vector<8x128xf32>
    %192 = arith.addf %185, %187 : vector<8x128xf32>
    %193 = vector.broadcast %57 : f32 to vector<8x128xf32>
    %194 = arith.addf %192, %193 : vector<8x128xf32>
    %195 = arith.addf %191, %194 : vector<8x128xf32>
    %196 = arith.addf %190, %195 : vector<8x128xf32>
    %cst_12 = arith.constant 0.000000e+00 : f32
    %197 = vector.broadcast %cst_12 : f32 to vector<8x128xf32>
    %198 = arith.maximumf %196, %197 : vector<8x128xf32>
    %199 = vector.broadcast %26 : f32 to vector<8x128xf32>
    %200 = arith.mulf %81, %199 : vector<8x128xf32>
    %201 = vector.broadcast %30 : f32 to vector<8x128xf32>
    %202 = arith.mulf %90, %201 : vector<8x128xf32>
    %203 = vector.broadcast %34 : f32 to vector<8x128xf32>
    %204 = arith.mulf %99, %203 : vector<8x128xf32>
    %205 = vector.broadcast %38 : f32 to vector<8x128xf32>
    %206 = arith.mulf %108, %205 : vector<8x128xf32>
    %207 = vector.broadcast %42 : f32 to vector<8x128xf32>
    %208 = arith.mulf %117, %207 : vector<8x128xf32>
    %209 = vector.broadcast %46 : f32 to vector<8x128xf32>
    %210 = arith.mulf %126, %209 : vector<8x128xf32>
    %211 = vector.broadcast %50 : f32 to vector<8x128xf32>
    %212 = arith.mulf %135, %211 : vector<8x128xf32>
    %213 = vector.broadcast %54 : f32 to vector<8x128xf32>
    %214 = arith.mulf %144, %213 : vector<8x128xf32>
    %215 = arith.addf %200, %202 : vector<8x128xf32>
    %216 = arith.addf %204, %206 : vector<8x128xf32>
    %217 = arith.addf %215, %216 : vector<8x128xf32>
    %218 = arith.addf %208, %210 : vector<8x128xf32>
    %219 = arith.addf %212, %214 : vector<8x128xf32>
    %220 = vector.broadcast %58 : f32 to vector<8x128xf32>
    %221 = arith.addf %219, %220 : vector<8x128xf32>
    %222 = arith.addf %218, %221 : vector<8x128xf32>
    %223 = arith.addf %217, %222 : vector<8x128xf32>
    %cst_13 = arith.constant 0.000000e+00 : f32
    %224 = vector.broadcast %cst_13 : f32 to vector<8x128xf32>
    %225 = arith.maximumf %223, %224 : vector<8x128xf32>
    %226 = vector.broadcast %27 : f32 to vector<8x128xf32>
    %227 = arith.mulf %81, %226 : vector<8x128xf32>
    %228 = vector.broadcast %31 : f32 to vector<8x128xf32>
    %229 = arith.mulf %90, %228 : vector<8x128xf32>
    %230 = vector.broadcast %35 : f32 to vector<8x128xf32>
    %231 = arith.mulf %99, %230 : vector<8x128xf32>
    %232 = vector.broadcast %39 : f32 to vector<8x128xf32>
    %233 = arith.mulf %108, %232 : vector<8x128xf32>
    %234 = vector.broadcast %43 : f32 to vector<8x128xf32>
    %235 = arith.mulf %117, %234 : vector<8x128xf32>
    %236 = vector.broadcast %47 : f32 to vector<8x128xf32>
    %237 = arith.mulf %126, %236 : vector<8x128xf32>
    %238 = vector.broadcast %51 : f32 to vector<8x128xf32>
    %239 = arith.mulf %135, %238 : vector<8x128xf32>
    %240 = vector.broadcast %55 : f32 to vector<8x128xf32>
    %241 = arith.mulf %144, %240 : vector<8x128xf32>
    %242 = arith.addf %227, %229 : vector<8x128xf32>
    %243 = arith.addf %231, %233 : vector<8x128xf32>
    %244 = arith.addf %242, %243 : vector<8x128xf32>
    %245 = arith.addf %235, %237 : vector<8x128xf32>
    %246 = arith.addf %239, %241 : vector<8x128xf32>
    %247 = vector.broadcast %59 : f32 to vector<8x128xf32>
    %248 = arith.addf %246, %247 : vector<8x128xf32>
    %249 = arith.addf %245, %248 : vector<8x128xf32>
    %250 = arith.addf %244, %249 : vector<8x128xf32>
    %cst_14 = arith.constant 0.000000e+00 : f32
    %251 = vector.broadcast %cst_14 : f32 to vector<8x128xf32>
    %252 = arith.maximumf %250, %251 : vector<8x128xf32>
    %253 = vector.broadcast %60 : f32 to vector<8x128xf32>
    %254 = arith.mulf %171, %253 : vector<8x128xf32>
    %255 = vector.broadcast %64 : f32 to vector<8x128xf32>
    %256 = arith.addf %254, %255 : vector<8x128xf32>
    %257 = vector.broadcast %61 : f32 to vector<8x128xf32>
    %258 = arith.mulf %198, %257 : vector<8x128xf32>
    %259 = vector.broadcast %62 : f32 to vector<8x128xf32>
    %260 = arith.mulf %225, %259 : vector<8x128xf32>
    %261 = vector.broadcast %63 : f32 to vector<8x128xf32>
    %262 = arith.mulf %252, %261 : vector<8x128xf32>
    %263 = arith.addf %256, %258 : vector<8x128xf32>
    %264 = arith.addf %260, %262 : vector<8x128xf32>
    %265 = arith.addf %263, %264 : vector<8x128xf32>
    %266 = math.tanh %265 : vector<8x128xf32>
    %c0_15 = arith.constant 0 : index
    %267 = arith.index_cast %66 : i32 to index
    %c0_16 = arith.constant 0 : index
    %268 = vector.load %arg3[%c0_15, %267, %c0_16] : memref<1x8x128xf32, #tpu.memory_space<vmem>>, vector<1x8x128xf32>
    %269 = vector.shape_cast %268 : vector<1x8x128xf32> to vector<8x128xf32>
    %270 = vector.shape_cast %266 : vector<8x128xf32> to vector<1x8x128xf32>
    tpu.vector_store %arg3[%c0_15, %267, %c0_16], %270 {strides = array<i32>} : memref<1x8x128xf32, #tpu.memory_space<vmem>>, vector<1x8x128xf32>,
    %c1_i32 = arith.constant 1 : i32
    return
  }
  func.func @transform_0(%arg0: i32) -> i32 {
    %c0_i32 = arith.constant 0 : i32
    %c0_i32_0 = arith.constant 0 : i32
    return %c0_i32 : i32
  }
  func.func @transform_1(%arg0: i32) -> (i32, i32, i32) {
    %c0_i32 = arith.constant 0 : i32
    %c0_i32_0 = arith.constant 0 : i32
    %c0_i32_1 = arith.constant 0 : i32
    return %c0_i32, %arg0, %c0_i32_0 : i32, i32, i32
  }
  func.func @transform_2(%arg0: i32) -> (i32, i32, i32) {
    %c0_i32 = arith.constant 0 : i32
    %c0_i32_0 = arith.constant 0 : i32
    %c0_i32_1 = arith.constant 0 : i32
    return %c0_i32, %arg0, %c0_i32_0 : i32, i32, i32
  }
}

</mosaic_0001>

<bundles_post_ra>
// kernel: tpu_custom_call.1
= control target key start
LH: loop header
LB: loop body
LE: loop exit
PB: predicated region body
PF: predicated region fallthrough
CT: control target
= control target key end

     0   :  { %7 = vsyncpa [#allocation5], 0  ;;  %s712_s0 = inlined_call_operand.hbm [shape: f32[65], index: 0, kind: input, shape index: {}]   ;;  %s713_s1 = inlined_call_operand.hbm [shape: f32[2,8,128], index: 1, kind: input, shape index: {}]   ;;  %s714_s2 = inlined_call_operand.hbm [shape: f32[1,8,128], index: 2, kind: output, shape index: {}]  }
   0x1   :  { %8 = vsyncpa [#allocation3], 0 }
   0x2   :  { %9 = vsyncpa [#allocation4], 0  ;;  %s377_s11 = scalar_lea.hbm %s712_s0, 16 }
   0x3   :  { %p378_p0 = scmp.ne.s32.totalorder %s712_s0, %s377_s11  ;;  %p381_p1 = scmp.lt.u32.totalorder %s377_s11, %s712_s0 }
   0x5   :  { %p383_p2 = pnand %p381_p1, %p378_p0 }
   0x7   :  { %386 = shalt.err (!%p383_p2)
}
   0x8   :  { %s437_s16 = smov [#allocation2]   ;;  %s438_s19 = smov [#allocation6]  }
   0x9   :  { %17 = dma.hbm_to_smem %s712_s0, 16, %s437_s16, [#allocation5]  }
   0xa   :  { %s23_s20 = sshll.u32 %s438_s19, 4  ;;  %s387_s23 = scalar_lea.hbm %s713_s1, 256  ;;  %s24_s20 = int_to_ptr.vmem [resolvable:$true] %s23_s20 }
   0xb   :  { %p388_p3 = scmp.ne.s32.totalorder %s713_s1, %s387_s23  ;;  %p391_p4 = scmp.lt.u32.totalorder %s387_s23, %s713_s1 }
   0xd   :  { %p393_p5 = pnand %p391_p4, %p388_p3 }
   0xf   :  { %396 = shalt.err (!%p393_p5)
}
  0x10   :  { %s397_s28 = scalar_lea.vmem %s24_s20, 256  ;;  %p402_p7 = scmp.lt.s32.totalorder %s24_s20, %s24_s20 }
  0x11   :  { %p398_p6 = scmp.ne.s32.totalorder %s24_s20, %s397_s28  ;;  %p403_p8 = scmp.lt.s32.totalorder %s397_s28, %s397_s28 }
  0x13   :  { %p404_p9 = por %p403_p8, %p402_p7 }
  0x15   :  { %p405_p10 = pnand %p404_p9, %p398_p6 }
  0x17   :  { %408 = shalt.err (!%p405_p10)
}
  0x18   :  { %s439_s0 = smov 128   ;;  %s440_s29 = smov 8  }
  0x19   :  { %29 = dma.hbm_to_vmem [thread:$0]  %s713_s1, 256, %s24_s20, [#allocation3], %s439_s0, %s439_s0, %s440_s29  }
  0x1a   :  { %431 = dma.done.wait [#allocation5], 16  }
  0x1b   :  { %432 = vsyncadd [#allocation5], 4294967280 }
  0x1c   :  { %433 = dma.done.wait [#allocation3], 256  }
  0x1d   :  { %434 = vsyncadd [#allocation3], 4294967040 }
  0x1e   :  { %36 = sfence }
  0x1f   :  { %s37_s4 = sld [smem:[#allocation2]]  ;;  %s306_s5 = sld [smem:[#allocation2 + $0x1]]  ;;  %v102_v0 = vld [vmem:[#allocation6] sm:$0xff]  ;;  %v105_v15 = vld [vmem:[#allocation6 + $0x8] sm:$0xff] }
  0x20   :  { %s307_s6 = sld [smem:[#allocation2 + $0x2]]  ;;  %s308_s7 = sld [smem:[#allocation2 + $0x3]] }
  0x21   :  { %s309_s8 = sld [smem:[#allocation2 + $0x4]]  ;;  %s310_s9 = sld [smem:[#allocation2 + $0x5]] }
  0x22   :  { %s481_s10 = sld [smem:[#allocation2 + $0x6]]  ;;  %s483_s11 = sld [smem:[#allocation2 + $0x7]] }
  0x23   :  { %s485_s12 = sld [smem:[#allocation2 + $0x8]]  ;;  %s487_s13 = sld [smem:[#allocation2 + $0x9]] }
  0x24   :  { %s489_s1 = sld [smem:[#allocation2 + $0xa]]  ;;  %s491_s14 = sld [smem:[#allocation2 + $0xb]] }
  0x25   :  { %s493_s15 = sld [smem:[#allocation2 + $0xc]]  ;;  %s495_s16 = sld [smem:[#allocation2 + $0xd]]  ;;  %v106_v1 = vstv %s37_s4  ;;  %v114_v2 = vstv %s306_s5 }
  0x26   :  { %s497_s17 = sld [smem:[#allocation2 + $0xe]]  ;;  %s499_s18 = sld [smem:[#allocation2 + $0xf]]  ;;  %v107_v3 = vmul.f32 %v106_v1, %v102_v0  ;;  %v115_v4 = vmul.f32 %v114_v2, %v102_v0  ;;  %v122_v5 = vstv %s307_s6  ;;  %v130_v6 = vstv %s308_s7 }
  0x27   :  { %s501_s19 = sld [smem:[#allocation2 + $0x10]]  ;;  %s503_s20 = sld [smem:[#allocation2 + $0x11]]  ;;  %v123_v7 = vmul.f32 %v122_v5, %v102_v0  ;;  %v131_v8 = vmul.f32 %v130_v6, %v102_v0  ;;  %v138_v9 = vstv %s309_s8  ;;  %v146_v10 = vstv %s310_s9 }
  0x28   :  { %s505_s21 = sld [smem:[#allocation2 + $0x12]]  ;;  %s507_s22 = sld [smem:[#allocation2 + $0x13]]  ;;  %v139_v11 = vmul.f32 %v138_v9, %v102_v0  ;;  %v147_v12 = vmul.f32 %v146_v10, %v102_v0  ;;  %v154_v13 = vstv %s481_s10  ;;  %v162_v14 = vstv %s483_s11 }
  0x29   :  { %s511_s23 = sld [smem:[#allocation2 + $0x14]]  ;;  %s513_s24 = sld [smem:[#allocation2 + $0x15]]  ;;  %v110_v16 = vstv %s485_s12  ;;  %v118_v17 = vstv %s487_s13  ;;  %v155_v18 = vmul.f32 %v154_v13, %v102_v0  ;;  %v163_v19 = vmul.f32 %v162_v14, %v102_v0 }
  0x2a   :  { %s517_s25 = sld [smem:[#allocation2 + $0x16]]  ;;  %s519_s26 = sld [smem:[#allocation2 + $0x17]]  ;;  %v111_v20 = vmul.f32 %v110_v16, %v105_v15  ;;  %v119_v21 = vmul.f32 %v118_v17, %v105_v15  ;;  %v126_v22 = vstv %s489_s1  ;;  %v134_v23 = vstv %s491_s14 }
  0x2b   :  { %v127_v24 = vmul.f32 %v126_v22, %v105_v15  ;;  %v135_v25 = vmul.f32 %v134_v23, %v105_v15  ;;  %v142_v26 = vstv %s493_s15  ;;  %v150_v27 = vstv %s495_s16  ;;  %s525_s27 = sld [smem:[#allocation2 + $0x18]]  ;;  %s529_s28 = sld [smem:[#allocation2 + $0x1c]] }
  0x2c   :  { %v143_v28 = vmul.f32 %v142_v26, %v105_v15  ;;  %v151_v29 = vmul.f32 %v150_v27, %v105_v15  ;;  %v158_v30 = vstv %s497_s17  ;;  %v166_v31 = vstv %s499_s18  ;;  %s533_s0 = sld [smem:[#allocation2 + $0x19]]  ;;  %s535_s29 = sld [smem:[#allocation2 + $0x1d]] }
  0x2d   :  { %v108_v32 = vstv %s501_s19  ;;  %v116_v33 = vstv %s503_s20  ;;  %v159_v34 = vmul.f32 %v158_v30, %v105_v15  ;;  %v167_v35 = vmul.f32 %v166_v31, %v105_v15  ;;  %s539_s30 = sld [smem:[#allocation2 + $0x20]]  ;;  %s541_s3 = sld [smem:[#allocation2 + $0x21]] }
  0x2e   :  { %v109_v36 = vadd.f32 %v108_v32, %v107_v3  ;;  %v117_v37 = vadd.f32 %v116_v33, %v115_v4  ;;  %v124_v38 = vstv %s505_s21  ;;  %v132_v39 = vstv %s507_s22  ;;  %s545_s4 = sld [smem:[#allocation2 + $0x24]]  ;;  %s547_s5 = sld [smem:[#allocation2 + $0x25]] }
  0x2f   :  { %v125_v40 = vadd.f32 %v124_v38, %v123_v7  ;;  %v133_v41 = vadd.f32 %v132_v39, %v131_v8  ;;  %v140_v42 = vstv %s511_s23  ;;  %v148_v43 = vstv %s513_s24  ;;  %s551_s6 = sld [smem:[#allocation2 + $0x1a]]  ;;  %s557_s7 = sld [smem:[#allocation2 + $0x28]] }
  0x30   :  { %v112_v44 = vadd.f32 %v111_v20, %v109_v36  ;;  %v120_v45 = vadd.f32 %v119_v21, %v117_v37  ;;  %v141_v46 = vadd.f32 %v140_v42, %v139_v11  ;;  %v149_v47 = vadd.f32 %v148_v43, %v147_v12  ;;  %s559_s8 = sld [smem:[#allocation2 + $0x29]]  ;;  %s565_s9 = sld [smem:[#allocation2 + $0x1e]] }
  0x31   :  { %v128_v48 = vadd.f32 %v127_v24, %v125_v40  ;;  %v136_v49 = vadd.f32 %v135_v25, %v133_v41  ;;  %v156_v50 = vstv %s517_s25  ;;  %v164_v51 = vstv %s519_s26  ;;  %s573_s10 = sld [smem:[#allocation2 + $0x2c]]  ;;  %s575_s11 = sld [smem:[#allocation2 + $0x2d]] }
  0x32   :  { %v553_v52 = vmax.f32 %v112_v44, 0.0  ;;  %v555_v53 = vmax.f32 %v120_v45, 0.0  ;;  %v144_v54 = vadd.f32 %v143_v28, %v141_v46  ;;  %v152_v55 = vadd.f32 %v151_v29, %v149_v47  ;;  %s579_s12 = sld [smem:[#allocation2 + $0x22]]  ;;  %s581_s13 = sld [smem:[#allocation2 + $0x26]] }
  0x33   :  { %v561_v56 = vmax.f32 %v128_v48, 0.0  ;;  %v563_v57 = vmax.f32 %v136_v49, 0.0  ;;  %v157_v58 = vadd.f32 %v156_v50, %v155_v18  ;;  %v165_v59 = vadd.f32 %v164_v51, %v163_v19  ;;  %s587_s1 = sld [smem:[#allocation2 + $0x30]]  ;;  %s589_s14 = sld [smem:[#allocation2 + $0x31]] }
  0x34   :  { %v567_v60 = vmax.f32 %v144_v54, 0.0  ;;  %v569_v61 = vmax.f32 %v152_v55, 0.0  ;;  %v170_v62 = vstv %s525_s27  ;;  %v172_v63 = vstv %s529_s28  ;;  %s597_s15 = sld [smem:[#allocation2 + $0x2a]]  ;;  %s599_s16 = sld [smem:[#allocation2 + $0x2e]] }
  0x35   :  { %v160_v0 = vadd.f32 %v159_v34, %v157_v58  ;;  %v168_v1 = vadd.f32 %v167_v35, %v165_v59  ;;  %v171_v2 = vmul.f32 %v170_v62, %v553_v52  ;;  %v173_v3 = vmul.f32 %v172_v63, %v555_v53  ;;  %s604_s17 = sld [smem:[#allocation2 + $0x34]]  ;;  %s606_s18 = sld [smem:[#allocation2 + $0x35]] }
  0x36   :  { %v174_v4 = vstv %s539_s30  ;;  %v196_v5 = vstv %s533_s0  ;;  %v198_v6 = vstv %s535_s29  ;;  %v200_v7 = vstv %s541_s3  ;;  %s612_s19 = sld [smem:[#allocation2 + $0x32]]  ;;  %s614_s20 = sld [smem:[#allocation2 + $0x36]] }
  0x37   :  { %v591_v8 = vmax.f32 %v160_v0, 0.0  ;;  %v593_v9 = vmax.f32 %v168_v1, 0.0  ;;  %v175_v10 = vmul.f32 %v174_v4, %v561_v56  ;;  %v176_v11 = vstv %s545_s4  ;;  %s619_s21 = sld [smem:[#allocation2 + $0x38]]  ;;  %s621_s22 = sld [smem:[#allocation2 + $0x39]] }
  0x38   :  { %v177_v12 = vmul.f32 %v176_v11, %v563_v57  ;;  %v186_v13 = vadd.f32 %v173_v3, %v171_v2  ;;  %v197_v14 = vmul.f32 %v196_v5, %v553_v52  ;;  %v199_v15 = vmul.f32 %v198_v6, %v555_v53  ;;  %s628_s23 = sld [smem:[#allocation2 + $0x3a]]  ;;  %s634_s24 = sld [smem:[#allocation2 + $0x1b]] }
  0x39   :  { %v178_v16 = vstv %s557_s7  ;;  %v201_v17 = vmul.f32 %v200_v7, %v561_v56  ;;  %v202_v18 = vstv %s547_s5  ;;  %v204_v19 = vstv %s559_s8  ;;  %s638_s25 = sld [smem:[#allocation2 + $0x1f]]  ;;  %s640_s26 = sld [smem:[#allocation2 + $0x23]] }
  0x3a   :  { %v179_v20 = vmul.f32 %v178_v16, %v567_v60  ;;  %v187_v21 = vadd.f32 %v177_v12, %v175_v10  ;;  %v203_v22 = vmul.f32 %v202_v18, %v563_v57  ;;  %v205_v23 = vmul.f32 %v204_v19, %v567_v60  ;;  %s645_s27 = sld [smem:[#allocation2 + $0x27]]  ;;  %s651_s28 = sld [smem:[#allocation2 + $0x2b]] }
  0x3b   :  { %v180_v24 = vstv %s573_s10  ;;  %v206_v25 = vstv %s575_s11  ;;  %v212_v26 = vadd.f32 %v199_v15, %v197_v14  ;;  %v222_v27 = vstv %s551_s6  ;;  %s653_s0 = sld [smem:[#allocation2 + $0x2f]]  ;;  %s661_s29 = sld [smem:[#allocation2 + $0x33]] }
  0x3c   :  { %v181_v28 = vmul.f32 %v180_v24, %v569_v61  ;;  %v188_v29 = vadd.f32 %v187_v21, %v186_v13  ;;  %v207_v30 = vmul.f32 %v206_v25, %v569_v61  ;;  %v213_v31 = vadd.f32 %v203_v22, %v201_v17  ;;  %s663_s30 = sld [smem:[#allocation2 + $0x37]]  ;;  %s671_s3 = sld [smem:[#allocation2 + $0x3b]] }
  0x3d   :  { %v182_v32 = vstv %s587_s1  ;;  %v208_v33 = vstv %s589_s14  ;;  %v223_v34 = vmul.f32 %v222_v27, %v553_v52  ;;  %v224_v35 = vstv %s565_s9  ;;  %s673_s4 = sld [smem:[#allocation2 + $0x3c]]  ;;  %s681_s5 = sld [smem:[#allocation2 + $0x3d]] }
  0x3e   :  { %v183_v36 = vmul.f32 %v182_v32, %v591_v8  ;;  %v189_v37 = vadd.f32 %v181_v28, %v179_v20  ;;  %v209_v38 = vmul.f32 %v208_v33, %v591_v8  ;;  %v214_v39 = vadd.f32 %v213_v31, %v212_v26  ;;  %s683_s6 = sld [smem:[#allocation2 + $0x40]]  ;;  %s367_s7 = sld [smem:[#allocation2 + $0x3e]] }
  0x3f   :  { %v184_v40 = vstv %s604_s17  ;;  %v210_v41 = vstv %s606_s18  ;;  %v215_v42 = vadd.f32 %v207_v30, %v205_v23  ;;  %v225_v43 = vmul.f32 %v224_v35, %v555_v53  ;;  %s368_s8 = sld [smem:[#allocation2 + $0x3f]]  ;;  %s441_s9 = smov [#allocation7]  }
  0x40   :  { %v185_v44 = vmul.f32 %v184_v40, %v593_v9  ;;  %v211_v45 = vmul.f32 %v210_v41, %v593_v9  ;;  %v226_v46 = vstv %s579_s12  ;;  %v228_v47 = vstv %s581_s13  ;;  %s295_s10 = sshll.u32 %s441_s9, 4  ;;  %s296_s10 = int_to_ptr.vmem [resolvable:$true] %s295_s10 }
  0x41   :  { %v191_v48 = vstv %s619_s21  ;;  %v217_v49 = vstv %s621_s22  ;;  %v227_v50 = vmul.f32 %v226_v46, %v561_v56  ;;  %v229_v51 = vmul.f32 %v228_v47, %v563_v57  ;;  %s409_s11 = scalar_lea.vmem %s296_s10, 128  ;;  %p414_p12 = scmp.lt.s32.totalorder %s296_s10, %s296_s10 }
  0x42   :  { %v190_v54 = vadd.f32 %v185_v44, %v183_v36  ;;  %v216_v55 = vadd.f32 %v211_v45, %v209_v38  ;;  %v230_v58 = vstv %s597_s15  ;;  %v232_v59 = vstv %s599_s16  ;;  %p410_p11 = scmp.ne.s32.totalorder %s296_s10, %s409_s11  ;;  %p415_p13 = scmp.lt.s32.totalorder %s409_s11, %s409_s11 }
  0x43   :  { %v231_v62 = vmul.f32 %v230_v58, %v567_v60  ;;  %v233_v63 = vmul.f32 %v232_v59, %v569_v61  ;;  %v234_v0 = vstv %s612_s19  ;;  %v236_v1 = vstv %s614_s20 }
  0x44   :  { %v192_v2 = vadd.f32 %v191_v48, %v190_v54  ;;  %v218_v3 = vadd.f32 %v217_v49, %v216_v55  ;;  %v235_v4 = vmul.f32 %v234_v0, %v591_v8  ;;  %v237_v5 = vmul.f32 %v236_v1, %v593_v9  ;;  %p416_p0 = por %p415_p13, %p414_p12 }
  0x45   :  { %v238_v6 = vadd.f32 %v225_v43, %v223_v34  ;;  %v239_v7 = vadd.f32 %v229_v51, %v227_v50  ;;  %v241_v10 = vadd.f32 %v233_v63, %v231_v62  ;;  %v243_v11 = vstv %s628_s23 }
  0x46   :  { %v193_v12 = vadd.f32 %v192_v2, %v189_v37  ;;  %v219_v13 = vadd.f32 %v218_v3, %v215_v42  ;;  %v242_v14 = vadd.f32 %v237_v5, %v235_v4  ;;  %v248_v15 = vstv %s634_s24  ;;  %p417_p1 = pnand %p416_p0, %p410_p11 }
  0x47   :  { %v250_v16 = vstv %s638_s25  ;;  %v252_v17 = vstv %s640_s26  ;;  %v249_v20 = vmul.f32 %v248_v15, %v553_v52  ;;  %v254_v23 = vstv %s645_s27 }
  0x48   :  { %v194_v18 = vadd.f32 %v193_v12, %v188_v29  ;;  %v244_v19 = vadd.f32 %v243_v11, %v242_v14  ;;  %v251_v21 = vmul.f32 %v250_v16, %v555_v53  ;;  %v253_v22 = vmul.f32 %v252_v17, %v561_v56 }
  0x49   :  { %v256_v24 = vstv %s651_s28  ;;  %v258_v25 = vstv %s653_s0  ;;  %v220_v26 = vadd.f32 %v219_v13, %v214_v39  ;;  %v240_v27 = vadd.f32 %v239_v7, %v238_v6 }
  0x4a   :  { %v245_v28 = vadd.f32 %v244_v19, %v241_v10  ;;  %v255_v29 = vmul.f32 %v254_v23, %v563_v57  ;;  %v257_v52 = vmul.f32 %v256_v24, %v567_v60  ;;  %v259_v53 = vmul.f32 %v258_v25, %v569_v61 }
  0x4b   :  { %v260_v30 = vstv %s661_s29  ;;  %v262_v31 = vstv %s663_s30  ;;  %v195_v32 = vmax.f32 %v194_v18, 0.0  ;;  %v264_v34 = vadd.f32 %v251_v21, %v249_v20 }
  0x4c   :  { %v261_v56 = vmul.f32 %v260_v30, %v591_v8  ;;  %v263_v33 = vmul.f32 %v262_v31, %v593_v9  ;;  %v265_v35 = vadd.f32 %v255_v29, %v253_v22  ;;  %v269_v36 = vstv %s671_s3 }
  0x4d   :  { %v274_v37 = vstv %s673_s4  ;;  %v246_v57 = vadd.f32 %v245_v28, %v240_v27  ;;  %v267_v38 = vadd.f32 %v259_v53, %v257_v52  ;;  %v221_v60 = vmax.f32 %v220_v26, 0.0 }
  0x4e   :  { %v268_v39 = vadd.f32 %v263_v33, %v261_v56  ;;  %v266_v40 = vadd.f32 %v265_v35, %v264_v34  ;;  %v275_v41 = vmul.f32 %v274_v37, %v195_v32  ;;  %v276_v42 = vstv %s683_s6 }
  0x4f   :  { %v278_v43 = vstv %s681_s5  ;;  %v247_v44 = vmax.f32 %v246_v57, 0.0  ;;  %v280_v46 = vstv %s367_s7  ;;  %v282_v48 = vstv %s368_s8 }
  0x50   :  { %v270_v61 = vadd.f32 %v269_v36, %v268_v39  ;;  %v277_v47 = vadd.f32 %v276_v42, %v275_v41  ;;  %v279_v9 = vmul.f32 %v278_v43, %v221_v60 }
  0x51   :  { %v281_v50 = vmul.f32 %v280_v46, %v247_v44 }
  0x52   :  { %v271_v45 = vadd.f32 %v270_v61, %v267_v38  ;;  %v284_v54 = vadd.f32 %v279_v9, %v277_v47 }
  0x54   :  { %v272_v8 = vadd.f32 %v271_v45, %v266_v40 }
  0x56   :  { %v273_v49 = vmax.f32 %v272_v8, 0.0 }
  0x58   :  { %v283_v51 = vmul.f32 %v282_v48, %v273_v49 }
  0x5a   :  { %v285_v55 = vadd.f32 %v283_v51, %v281_v50 }
  0x5c   :  { %v286_v58 = vadd.f32 %v285_v55, %v284_v54 }
  0x5e   :  { %375 = vtanh.f32 %v286_v58 }
  0x68   :  { %v376_v59 = vpop.eup %375 }
  0x69   :  { %288 = vst [vmem:[#allocation7] sm:$0xff] %v376_v59 }
  0x6a   :  { %420 = shalt.err (!%p417_p1)
}
  0x6b   :  { %s421_s1 = scalar_lea.hbm %s714_s2, 128 }
  0x6c   :  { %p422_p2 = scmp.ne.s32.totalorder %s714_s2, %s421_s1  ;;  %p425_p3 = scmp.lt.u32.totalorder %s421_s1, %s714_s2 }
  0x6e   :  { %p427_p4 = pnand %p425_p3, %p422_p2 }
  0x70   :  { %430 = shalt.err (!%p427_p4)
}
  0x71   :  { %298 = dma.vmem_to_hbm [thread:$0]  %s296_s10, 128, %s714_s2, [#allocation4]  }
  0x72   :  { %435 = dma.done.wait [#allocation4], 128  }
  0x73   :  { %436 = vsyncadd [#allocation4], 4294967168 }
  0x74   :  { %302 = vsyncpa [#allocation3], 1 }
  0x75   :  { %303 = vsyncpa [#allocation4], 1 }
  0x76   :  { %304 = vsyncpa [#allocation5], 1 }

</bundles_post_ra>
